<compile_context>
chip_gen: v6e
topology: v6e:2x2x1
jax: 0.10.0
libtpu: 0.0.40
codegen_flags: <defaults>
</compile_context>

<pallas_src>
import functools

import jax
import jax.numpy as jnp
from jax.experimental import pallas as pl
from jax.experimental.pallas import tpu as pltpu


def _round_up(x, m):
    return (x + m - 1) // m * m


def mutan_kernel(x0_ref, x1_ref,
                 w0_ref, b0_ref,
                 w1_ref, b1_ref,
                 wm0_ref, bm0_ref,
                 wm1_ref, bm1_ref,
                 wout_ref, bout_ref,
                 out_ref,
                 x0b_ref, x1b_ref, z_ref,
                 *, rank_block, mm_dim):
    """One (batch-tile, rank-block) grid step."""
    f32 = jnp.float32
    bf16 = jnp.bfloat16
    r = pl.program_id(1)
    last_r = pl.num_programs(1) - 1

    # linear0 / linear1 once per batch tile (bf16 MXU operands, f32 accumulate,
    # f32 bias add); results cached in VMEM scratch for the whole rank sweep.
    @pl.when(r == 0)
    def _lin_in():
        x0 = jnp.dot(x0_ref[...], w0_ref[...],
                     preferred_element_type=f32) + b0_ref[...]
        x1 = jnp.dot(x1_ref[...], w1_ref[...],
                     preferred_element_type=f32) + b1_ref[...]
        # TODO(synk): dropout_input / dropout_pre_lin / dropout_output are 0 by
        # default (identity at inference); training-time dropout not implemented.
        x0b_ref[...] = x0.astype(bf16)
        x1b_ref[...] = x1.astype(bf16)

    # merge_linear0/1 for this rank block: one wide (tile_b, mm_dim) @
    # (mm_dim, rank_block*mm_dim) matmul per side, elementwise product, then the
    # in-block rank reduction (static lane slices at mm_dim boundaries).
    m0 = jnp.dot(x0b_ref[...], wm0_ref[...],
                 preferred_element_type=f32) + bm0_ref[...]
    m1 = jnp.dot(x1b_ref[...], wm1_ref[...],
                 preferred_element_type=f32) + bm1_ref[...]
    t = m0 * m1                                   # f32 elementwise on the VPU
    psum = t[:, :mm_dim]
    for j in range(1, rank_block):                # small static unroll
        psum = psum + t[:, j * mm_dim:(j + 1) * mm_dim]

    @pl.when(r == 0)
    def _z_init():
        z_ref[...] = psum

    @pl.when(r != 0)
    def _z_acc():
        z_ref[...] = z_ref[...] + psum

    # TODO(synk): normalize=True branch (signed-sqrt + L2 normalize) not needed
    # for the module defaults; add with jnp.sqrt/relu + rsqrt if required.

    # linear_out on the final rank block (output lanes padded to a multiple of
    # 128 by the wrapper -> unmasked, lane-dense stores).
    @pl.when(r == last_r)
    def _lin_out():
        y = jnp.dot(z_ref[...].astype(bf16), wout_ref[...],
                    preferred_element_type=f32) + bout_ref[...]
        out_ref[...] = y.astype(out_ref.dtype)


def mutan_forward(x0_in, x1_in, params, *, rank, mm_dim, output_dim,
                  tile_b=256, out_dtype=None):
    B, d0 = x0_in.shape
    _, d1 = x1_in.shape
    out_dtype = x0_in.dtype if out_dtype is None else out_dtype

    # ---- adaptive batch tiling: pad only as much as the tile needs -----------
    tile_b = min(tile_b, _round_up(B, 16))        # 16 = bf16 sublane packing
    b_pad = _round_up(B, tile_b)
    n_btiles = b_pad // tile_b

    # ---- lane-dense output slab ----------------------------------------------
    out_pad = _round_up(output_dim, 128)

    # ---- rank blocking: widen the merge-matmul N to ~256 lanes when the
    # per-rank slice is narrower than the MXU ----------------------------------
    rank_block = 1 if mm_dim >= 256 else max(1, min(rank, 256 // mm_dim))
    rank_pad = _round_up(rank, rank_block)
    n_rblocks = rank_pad // rank_block
    rbm = rank_block * mm_dim

    # ---- input / parameter prep (host-side casts / reshapes) -----------------
    x0 = x0_in.astype(jnp.bfloat16)               # stream activations in bf16
    x1 = x1_in.astype(jnp.bfloat16)
    if b_pad != B:
        x0 = jnp.pad(x0, ((0, b_pad - B), (0, 0)))
        x1 = jnp.pad(x1, ((0, b_pad - B), (0, 0)))

    def prep_merge(w, b):
        # (mm_dim, mm_dim*rank) -> (n_rblocks, mm_dim, rank_block*mm_dim).  The
        # column layout is [rank 0 | rank 1 | ...], so grouping consecutive rank
        # slices preserves the PyTorch .view(-1, rank, mm_dim).sum(1) semantics;
        # padded rank slices have zero weights AND zero biases -> contribute 0.
        if rank_pad != rank:
            w = jnp.pad(w, ((0, 0), (0, (rank_pad - rank) * mm_dim)))
            b = jnp.pad(b, ((0, 0), (0, (rank_pad - rank) * mm_dim)))
        w = w.reshape(mm_dim, n_rblocks, rbm).transpose(1, 0, 2)
        b = b.reshape(n_rblocks, 1, rbm)
        return w, b

    wm0, bm0 = prep_merge(params["wm0"], params["bm0"])
    wm1, bm1 = prep_merge(params["wm1"], params["bm1"])

    wout, bout = params["wout"], params["bout"]
    if out_pad != output_dim:
        wout = jnp.pad(wout, ((0, 0), (0, out_pad - output_dim)))
        bout = jnp.pad(bout, ((0, 0), (0, out_pad - output_dim)))

    grid = (n_btiles, n_rblocks)

    def rows(shape):        # activation/output tiles: move with the batch axis
        return pl.BlockSpec(shape, lambda i, r: (i, 0))

    def resident(shape):    # never-changing weights/biases: single buffer
        return pl.BlockSpec(shape, lambda i, r: (0,) * len(shape),
                            pipeline_mode=pl.Buffered(1))

    def rank_stream(shape):  # merge weights/biases: one rank block per step
        return pl.BlockSpec((None,) + shape, lambda i, r: (r, 0, 0))

    in_specs = [
        rows((tile_b, d0)),                       # x0 (bf16)
        rows((tile_b, d1)),                       # x1 (bf16)
        resident((d0, mm_dim)),                   # w0
        resident((1, mm_dim)),                    # b0
        resident((d1, mm_dim)),                   # w1
        resident((1, mm_dim)),                    # b1
        rank_stream((mm_dim, rbm)),               # wm0 (rank-block streamed)
        rank_stream((1, rbm)),                    # bm0
        rank_stream((mm_dim, rbm)),               # wm1
        rank_stream((1, rbm)),                    # bm1
        resident((mm_dim, out_pad)),              # wout (padded lanes)
        resident((1, out_pad)),                   # bout
    ]
    out_spec = rows((tile_b, out_pad))

    scratch_shapes = [
        pltpu.VMEM((tile_b, mm_dim), jnp.bfloat16),   # x0b
        pltpu.VMEM((tile_b, mm_dim), jnp.bfloat16),   # x1b
        pltpu.VMEM((tile_b, mm_dim), jnp.float32),    # z accumulator
    ]

    # ---- VMEM budget (single-buffered residents, double-buffered streams) ----
    out_itemsize = jnp.dtype(out_dtype).itemsize
    resident_bytes = (2 * (d0 * mm_dim + d1 * mm_dim + mm_dim * out_pad)
                      + 4 * (2 * mm_dim + out_pad))
    streamed_bytes = 2 * (2 * tile_b * (d0 + d1)          # x0/x1 (bf16)
                          + 2 * (2 * mm_dim * rbm)        # wm0/wm1 (bf16)
                          + 4 * (2 * rbm)                 # bm0/bm1 (f32)
                          + out_itemsize * tile_b * out_pad)
    scratch_bytes = 2 * (2 * tile_b * mm_dim) + 4 * tile_b * mm_dim
    interm_bytes = 4 * tile_b * (3 * rbm + 2 * mm_dim + out_pad)
    needed = (resident_bytes + streamed_bytes + scratch_bytes
              + interm_bytes + (4 << 20))
    try:
        vmem_cap = int(pltpu.get_tpu_info().vmem_capacity_bytes)
    except Exception:                             # pragma: no cover
        vmem_cap = 64 << 20                       # conservative (v7x-sized)
    vmem_limit = max(16 << 20, min(int(needed), vmem_cap - (8 << 20)))

    # ---- cost hints -----------------------------------------------------------
    flops = b_pad * (2 * d0 * mm_dim + 2 * d1 * mm_dim
                     + 4 * mm_dim * rank_pad * mm_dim
                     + 2 * mm_dim * out_pad)
    bytes_accessed = (2 * b_pad * (d0 + d1)                          # acts in (bf16)
                      + n_btiles * 2 * (2 * mm_dim * rank_pad * mm_dim)  # merge w
                      + 2 * (d0 + d1 + out_pad) * mm_dim             # other weights
                      + 4 * (2 * mm_dim + 2 * rank_pad * mm_dim + out_pad)  # biases
                      + out_itemsize * b_pad * out_pad)              # output

    kernel = functools.partial(mutan_kernel, rank_block=rank_block, mm_dim=mm_dim)
    out = pl.pallas_call(
        kernel,
        out_shape=jax.ShapeDtypeStruct((b_pad, out_pad), out_dtype),
        grid=grid,
        in_specs=in_specs,
        out_specs=out_spec,
        scratch_shapes=scratch_shapes,
        compiler_params=pltpu.CompilerParams(
            dimension_semantics=("parallel", "arbitrary"),
            vmem_limit_bytes=int(vmem_limit)),
        cost_estimate=pl.CostEstimate(
            flops=int(flops), transcendentals=0,
            bytes_accessed=int(bytes_accessed)),
    )(x0, x1,
      params["w0"], params["b0"],
      params["w1"], params["b1"],
      wm0, bm0, wm1, bm1,
      wout, bout)

    return out[:B, :output_dim]


def init_params(key, input_dims, mm_dim, rank, output_dim):
    """Deterministic synthetic init (PyTorch nn.Linear-style uniform).
    Weights stored as (in, out) in bf16; biases as (1, out) in f32."""
    ks = jax.random.split(key, 10)
    d0, d1 = input_dims

    def lin(kw, kb, fan_in, fan_out):
        bound = 1.0 / jnp.sqrt(fan_in)
        w = jax.random.uniform(kw, (fan_in, fan_out), jnp.float32, -bound, bound)
        b = jax.random.uniform(kb, (1, fan_out), jnp.float32, -bound, bound)
        return w.astype(jnp.bfloat16), b

    w0, b0 = lin(ks[0], ks[1], d0, mm_dim)
    w1, b1 = lin(ks[2], ks[3], d1, mm_dim)
    wm0, bm0 = lin(ks[4], ks[5], mm_dim, mm_dim * rank)
    wm1, bm1 = lin(ks[6], ks[7], mm_dim, mm_dim * rank)
    wout, bout = lin(ks[8], ks[9], mm_dim, output_dim)
    return dict(w0=w0, b0=b0, w1=w1, b1=b1,
                wm0=wm0, bm0=bm0, wm1=wm1, bm1=bm1,
                wout=wout, bout=bout)


def mutan_reference(x0_in, x1_in, p, *, rank, mm_dim):
    """Pure-JAX reference that mirrors the kernel's dtype path (bf16 MXU
    operands, f32 accumulation) so the comparison isolates kernel correctness."""
    bf16, f32 = jnp.bfloat16, jnp.float32
    x0 = jnp.dot(x0_in.astype(bf16), p["w0"], preferred_element_type=f32) + p["b0"]
    x1 = jnp.dot(x1_in.astype(bf16), p["w1"], preferred_element_type=f32) + p["b1"]
    m0 = jnp.dot(x0.astype(bf16), p["wm0"], preferred_element_type=f32) + p["bm0"]
    m1 = jnp.dot(x1.astype(bf16), p["wm1"], preferred_element_type=f32) + p["bm1"]
    z = (m0 * m1).reshape(x0.shape[0], rank, mm_dim).sum(axis=1)
    return jnp.dot(z.astype(bf16), p["wout"], preferred_element_type=f32) + p["bout"]


if __name__ == "__main__":
    # Small, TPU-friendly shapes consistent with the module's forward.
    B = 8
    input_dims = (32, 48)
    mm_dim = 128
    rank = 4
    output_dim = 16

    key = jax.random.PRNGKey(0)
    k_x0, k_x1, k_p = jax.random.split(key, 3)
    x0_in = jax.random.normal(k_x0, (B, input_dims[0]), jnp.float32)
    x1_in = jax.random.normal(k_x1, (B, input_dims[1]), jnp.float32)
    params = init_params(k_p, input_dims, mm_dim, rank, output_dim)

    out = mutan_forward(x0_in, x1_in, params,
                        rank=rank, mm_dim=mm_dim, output_dim=output_dim)
    out = jax.block_until_ready(out)

    ref = mutan_reference(x0_in, x1_in, params, rank=rank, mm_dim=mm_dim)
    assert out.shape == (B, output_dim)
    assert jnp.allclose(out, ref, atol=2e-2, rtol=2e-2), \
        float(jnp.max(jnp.abs(out - ref)))

    print("KERNEL_OK")
</pallas_src>

<mosaic_0001>
module attributes {stable_mosaic.version = 11 : i64} {
  func.func @mutan_kernel(%arg0: i32, %arg1: i32, %arg2: memref<16x32xbf16, #tpu.memory_space<vmem>>, %arg3: memref<16x48xbf16, #tpu.memory_space<vmem>>, %arg4: memref<32x128xbf16, #tpu.memory_space<vmem>>, %arg5: memref<1x128xf32, #tpu.memory_space<vmem>>, %arg6: memref<48x128xbf16, #tpu.memory_space<vmem>>, %arg7: memref<1x128xf32, #tpu.memory_space<vmem>>, %arg8: memref<1x128x256xbf16, #tpu.memory_space<vmem>>, %arg9: memref<1x1x256xf32, #tpu.memory_space<vmem>>, %arg10: memref<1x128x256xbf16, #tpu.memory_space<vmem>>, %arg11: memref<1x1x256xf32, #tpu.memory_space<vmem>>, %arg12: memref<128x128xbf16, #tpu.memory_space<vmem>>, %arg13: memref<1x128xf32, #tpu.memory_space<vmem>>, %arg14: memref<16x128xf32, #tpu.memory_space<vmem>>, %arg15: memref<16x128xbf16, #tpu.memory_space<vmem>>, %arg16: memref<16x128xbf16, #tpu.memory_space<vmem>>, %arg17: memref<16x128xf32, #tpu.memory_space<vmem>>) attributes {dimension_semantics = [#tpu.dimension_semantics<parallel>, #tpu.dimension_semantics<arbitrary>], iteration_bounds = array<i64: 1, 2>, scalar_prefetch = 0 : i64, scratch_operands = 3 : i64, tpu.core_type = #tpu.core_type<tc>, window_params = [{transform_indices = @transform_0, window_bounds = array<i64: 16, 32>}, {transform_indices = @transform_1, window_bounds = array<i64: 16, 48>}, {pipeline_mode = #tpu.pipeline_mode<synchronous>, transform_indices = @transform_2, window_bounds = array<i64: 32, 128>}, {pipeline_mode = #tpu.pipeline_mode<synchronous>, transform_indices = @transform_3, window_bounds = array<i64: 1, 128>}, {pipeline_mode = #tpu.pipeline_mode<synchronous>, transform_indices = @transform_4, window_bounds = array<i64: 48, 128>}, {pipeline_mode = #tpu.pipeline_mode<synchronous>, transform_indices = @transform_5, window_bounds = array<i64: 1, 128>}, {transform_indices = @transform_6, window_bounds = array<i64: 1, 128, 256>}, {transform_indices = @transform_7, window_bounds = array<i64: 1, 1, 256>}, {transform_indices = @transform_8, window_bounds = array<i64: 1, 128, 256>}, {transform_indices = @transform_9, window_bounds = array<i64: 1, 1, 256>}, {pipeline_mode = #tpu.pipeline_mode<synchronous>, transform_indices = @transform_10, window_bounds = array<i64: 128, 128>}, {pipeline_mode = #tpu.pipeline_mode<synchronous>, transform_indices = @transform_11, window_bounds = array<i64: 1, 128>}, {transform_indices = @transform_12, window_bounds = array<i64: 16, 128>}]} {
    %c0_i32 = arith.constant 0 : i32
    %0 = arith.cmpi eq, %arg1, %c0_i32 : i32
    %1 = arith.extui %0 : i1 to i32
    %c0_i32_0 = arith.constant 0 : i32
    %2 = arith.cmpi ne, %1, %c0_i32_0 : i32
    scf.if %2 {
      %c0_22 = arith.constant 0 : index
      %c0_23 = arith.constant 0 : index
      %32 = vector.load %arg2[%c0_22, %c0_23] : memref<16x32xbf16, #tpu.memory_space<vmem>>, vector<16x32xbf16>
      %c0_24 = arith.constant 0 : index
      %c0_25 = arith.constant 0 : index
      %33 = vector.load %arg4[%c0_24, %c0_25] : memref<32x128xbf16, #tpu.memory_space<vmem>>, vector<32x128xbf16>
      %cst_26 = arith.constant dense<0.000000e+00> : vector<16x128xf32>
      %34 = tpu.matmul %32, %33, %cst_26 {dimension_numbers = #tpu.dot_dimension_numbers<[1], [0], [0], [1], [0, 0, 1, 1], [], []>} : vector<16x32xbf16>, vector<32x128xbf16>, vector<16x128xf32> -> vector<16x128xf32>
      %c0_27 = arith.constant 0 : index
      %c0_28 = arith.constant 0 : index
      %35 = vector.load %arg5[%c0_27, %c0_28] : memref<1x128xf32, #tpu.memory_space<vmem>>, vector<1x128xf32>
      %36 = vector.broadcast %35 : vector<1x128xf32> to vector<16x128xf32>
      %37 = arith.addf %34, %36 : vector<16x128xf32>
      %c0_29 = arith.constant 0 : index
      %c0_30 = arith.constant 0 : index
      %38 = vector.load %arg3[%c0_29, %c0_30] : memref<16x48xbf16, #tpu.memory_space<vmem>>, vector<16x48xbf16>
      %c0_31 = arith.constant 0 : index
      %c0_32 = arith.constant 0 : index
      %39 = vector.load %arg6[%c0_31, %c0_32] : memref<48x128xbf16, #tpu.memory_space<vmem>>, vector<48x128xbf16>
      %cst_33 = arith.constant dense<0.000000e+00> : vector<16x128xf32>
      %40 = tpu.matmul %38, %39, %cst_33 {dimension_numbers = #tpu.dot_dimension_numbers<[1], [0], [0], [1], [0, 0, 1, 1], [], []>} : vector<16x48xbf16>, vector<48x128xbf16>, vector<16x128xf32> -> vector<16x128xf32>
      %c0_34 = arith.constant 0 : index
      %c0_35 = arith.constant 0 : index
      %41 = vector.load %arg7[%c0_34, %c0_35] : memref<1x128xf32, #tpu.memory_space<vmem>>, vector<1x128xf32>
      %42 = vector.broadcast %41 : vector<1x128xf32> to vector<16x128xf32>
      %43 = arith.addf %40, %42 : vector<16x128xf32>
      %44 = arith.truncf %37 : vector<16x128xf32> to vector<16x128xbf16>
      %c0_36 = arith.constant 0 : index
      %c0_37 = arith.constant 0 : index
      %45 = vector.load %arg15[%c0_36, %c0_37] : memref<16x128xbf16, #tpu.memory_space<vmem>>, vector<16x128xbf16>
      tpu.vector_store %arg15[%c0_36, %c0_37], %44 {strides = array<i32>} : memref<16x128xbf16, #tpu.memory_space<vmem>>, vector<16x128xbf16>,
      %46 = arith.truncf %43 : vector<16x128xf32> to vector<16x128xbf16>
      %c0_38 = arith.constant 0 : index
      %c0_39 = arith.constant 0 : index
      %47 = vector.load %arg16[%c0_38, %c0_39] : memref<16x128xbf16, #tpu.memory_space<vmem>>, vector<16x128xbf16>
      tpu.vector_store %arg16[%c0_38, %c0_39], %46 {strides = array<i32>} : memref<16x128xbf16, #tpu.memory_space<vmem>>, vector<16x128xbf16>,
    } else {
    }
    %c0 = arith.constant 0 : index
    %c0_1 = arith.constant 0 : index
    %3 = vector.load %arg15[%c0, %c0_1] : memref<16x128xbf16, #tpu.memory_space<vmem>>, vector<16x128xbf16>
    %c0_2 = arith.constant 0 : index
    %c0_3 = arith.constant 0 : index
    %c0_4 = arith.constant 0 : index
    %4 = vector.load %arg8[%c0_2, %c0_3, %c0_4] : memref<1x128x256xbf16, #tpu.memory_space<vmem>>, vector<1x128x256xbf16>
    %5 = vector.shape_cast %4 : vector<1x128x256xbf16> to vector<128x256xbf16>
    %cst = arith.constant dense<0.000000e+00> : vector<16x256xf32>
    %6 = tpu.matmul %3, %5, %cst {dimension_numbers = #tpu.dot_dimension_numbers<[1], [0], [0], [1], [0, 0, 1, 1], [], []>} : vector<16x128xbf16>, vector<128x256xbf16>, vector<16x256xf32> -> vector<16x256xf32>
    %c0_5 = arith.constant 0 : index
    %c0_6 = arith.constant 0 : index
    %c0_7 = arith.constant 0 : index
    %7 = vector.load %arg9[%c0_5, %c0_6, %c0_7] : memref<1x1x256xf32, #tpu.memory_space<vmem>>, vector<1x1x256xf32>
    %8 = vector.shape_cast %7 : vector<1x1x256xf32> to vector<1x256xf32>
    %9 = vector.broadcast %8 : vector<1x256xf32> to vector<16x256xf32>
    %10 = arith.addf %6, %9 : vector<16x256xf32>
    %c0_8 = arith.constant 0 : index
    %c0_9 = arith.constant 0 : index
    %11 = vector.load %arg16[%c0_8, %c0_9] : memref<16x128xbf16, #tpu.memory_space<vmem>>, vector<16x128xbf16>
    %c0_10 = arith.constant 0 : index
    %c0_11 = arith.constant 0 : index
    %c0_12 = arith.constant 0 : index
    %12 = vector.load %arg10[%c0_10, %c0_11, %c0_12] : memref<1x128x256xbf16, #tpu.memory_space<vmem>>, vector<1x128x256xbf16>
    %13 = vector.shape_cast %12 : vector<1x128x256xbf16> to vector<128x256xbf16>
    %cst_13 = arith.constant dense<0.000000e+00> : vector<16x256xf32>
    %14 = tpu.matmul %11, %13, %cst_13 {dimension_numbers = #tpu.dot_dimension_numbers<[1], [0], [0], [1], [0, 0, 1, 1], [], []>} : vector<16x128xbf16>, vector<128x256xbf16>, vector<16x256xf32> -> vector<16x256xf32>
    %c0_14 = arith.constant 0 : index
    %c0_15 = arith.constant 0 : index
    %c0_16 = arith.constant 0 : index
    %15 = vector.load %arg11[%c0_14, %c0_15, %c0_16] : memref<1x1x256xf32, #tpu.memory_space<vmem>>, vector<1x1x256xf32>
    %16 = vector.shape_cast %15 : vector<1x1x256xf32> to vector<1x256xf32>
    %17 = vector.broadcast %16 : vector<1x256xf32> to vector<16x256xf32>
    %18 = arith.addf %14, %17 : vector<16x256xf32>
    %19 = arith.mulf %10, %18 : vector<16x256xf32>
    %20 = vector.extract_strided_slice %19 {offsets = [0, 0], sizes = [16, 128], strides = [1, 1]} : vector<16x256xf32> to vector<16x128xf32>
    %21 = vector.extract_strided_slice %19 {offsets = [0, 128], sizes = [16, 128], strides = [1, 1]} : vector<16x256xf32> to vector<16x128xf32>
    %22 = arith.addf %20, %21 : vector<16x128xf32>
    %c0_i32_17 = arith.constant 0 : i32
    %23 = arith.cmpi eq, %arg1, %c0_i32_17 : i32
    %24 = arith.extui %23 : i1 to i32
    %c0_i32_18 = arith.constant 0 : i32
    %25 = arith.cmpi ne, %24, %c0_i32_18 : i32
    scf.if %25 {
      %c0_22 = arith.constant 0 : index
      %c0_23 = arith.constant 0 : index
      %32 = vector.load %arg17[%c0_22, %c0_23] : memref<16x128xf32, #tpu.memory_space<vmem>>, vector<16x128xf32>
      tpu.vector_store %arg17[%c0_22, %c0_23], %22 {strides = array<i32>} : memref<16x128xf32, #tpu.memory_space<vmem>>, vector<16x128xf32>,
    } else {
    }
    %c0_i32_19 = arith.constant 0 : i32
    %26 = arith.cmpi ne, %arg1, %c0_i32_19 : i32
    %27 = arith.extui %26 : i1 to i32
    %c0_i32_20 = arith.constant 0 : i32
    %28 = arith.cmpi ne, %27, %c0_i32_20 : i32
    scf.if %28 {
      %c0_22 = arith.constant 0 : index
      %c0_23 = arith.constant 0 : index
      %32 = vector.load %arg17[%c0_22, %c0_23] : memref<16x128xf32, #tpu.memory_space<vmem>>, vector<16x128xf32>
      %33 = arith.addf %32, %22 : vector<16x128xf32>
      %c0_24 = arith.constant 0 : index
      %c0_25 = arith.constant 0 : index
      %34 = vector.load %arg17[%c0_24, %c0_25] : memref<16x128xf32, #tpu.memory_space<vmem>>, vector<16x128xf32>
      tpu.vector_store %arg17[%c0_24, %c0_25], %33 {strides = array<i32>} : memref<16x128xf32, #tpu.memory_space<vmem>>, vector<16x128xf32>,
    } else {
    }
    %c1_i32 = arith.constant 1 : i32
    %29 = arith.cmpi eq, %arg1, %c1_i32 : i32
    %30 = arith.extui %29 : i1 to i32
    %c0_i32_21 = arith.constant 0 : i32
    %31 = arith.cmpi ne, %30, %c0_i32_21 : i32
    scf.if %31 {
      %c0_22 = arith.constant 0 : index
      %c0_23 = arith.constant 0 : index
      %32 = vector.load %arg17[%c0_22, %c0_23] : memref<16x128xf32, #tpu.memory_space<vmem>>, vector<16x128xf32>
      %33 = arith.truncf %32 : vector<16x128xf32> to vector<16x128xbf16>
      %c0_24 = arith.constant 0 : index
      %c0_25 = arith.constant 0 : index
      %34 = vector.load %arg12[%c0_24, %c0_25] : memref<128x128xbf16, #tpu.memory_space<vmem>>, vector<128x128xbf16>
      %cst_26 = arith.constant dense<0.000000e+00> : vector<16x128xf32>
      %35 = tpu.matmul %33, %34, %cst_26 {dimension_numbers = #tpu.dot_dimension_numbers<[1], [0], [0], [1], [0, 0, 1, 1], [], []>} : vector<16x128xbf16>, vector<128x128xbf16>, vector<16x128xf32> -> vector<16x128xf32>
      %c0_27 = arith.constant 0 : index
      %c0_28 = arith.constant 0 : index
      %36 = vector.load %arg13[%c0_27, %c0_28] : memref<1x128xf32, #tpu.memory_space<vmem>>, vector<1x128xf32>
      %37 = vector.broadcast %36 : vector<1x128xf32> to vector<16x128xf32>
      %38 = arith.addf %35, %37 : vector<16x128xf32>
      %c0_29 = arith.constant 0 : index
      %c0_30 = arith.constant 0 : index
      %39 = vector.load %arg14[%c0_29, %c0_30] : memref<16x128xf32, #tpu.memory_space<vmem>>, vector<16x128xf32>
      tpu.vector_store %arg14[%c0_29, %c0_30], %38 {strides = array<i32>} : memref<16x128xf32, #tpu.memory_space<vmem>>, vector<16x128xf32>,
    } else {
    }
    return
  }
  func.func @transform_0(%arg0: i32, %arg1: i32) -> (i32, i32) {
    %c0_i32 = arith.constant 0 : i32
    %c0_i32_0 = arith.constant 0 : i32
    return %arg0, %c0_i32 : i32, i32
  }
  func.func @transform_1(%arg0: i32, %arg1: i32) -> (i32, i32) {
    %c0_i32 = arith.constant 0 : i32
    %c0_i32_0 = arith.constant 0 : i32
    return %arg0, %c0_i32 : i32, i32
  }
  func.func @transform_2(%arg0: i32, %arg1: i32) -> (i32, i32) {
    %c0_i32 = arith.constant 0 : i32
    %c0_i32_0 = arith.constant 0 : i32
    %c0_i32_1 = arith.constant 0 : i32
    return %c0_i32, %c0_i32_0 : i32, i32
  }
  func.func @transform_3(%arg0: i32, %arg1: i32) -> (i32, i32) {
    %c0_i32 = arith.constant 0 : i32
    %c0_i32_0 = arith.constant 0 : i32
    %c0_i32_1 = arith.constant 0 : i32
    return %c0_i32, %c0_i32_0 : i32, i32
  }
  func.func @transform_4(%arg0: i32, %arg1: i32) -> (i32, i32) {
    %c0_i32 = arith.constant 0 : i32
    %c0_i32_0 = arith.constant 0 : i32
    %c0_i32_1 = arith.constant 0 : i32
    return %c0_i32, %c0_i32_0 : i32, i32
  }
  func.func @transform_5(%arg0: i32, %arg1: i32) -> (i32, i32) {
    %c0_i32 = arith.constant 0 : i32
    %c0_i32_0 = arith.constant 0 : i32
    %c0_i32_1 = arith.constant 0 : i32
    return %c0_i32, %c0_i32_0 : i32, i32
  }
  func.func @transform_6(%arg0: i32, %arg1: i32) -> (i32, i32, i32) {
    %c0_i32 = arith.constant 0 : i32
    %c0_i32_0 = arith.constant 0 : i32
    %c0_i32_1 = arith.constant 0 : i32
    return %arg1, %c0_i32, %c0_i32_0 : i32, i32, i32
  }
  func.func @transform_7(%arg0: i32, %arg1: i32) -> (i32, i32, i32) {
    %c0_i32 = arith.constant 0 : i32
    %c0_i32_0 = arith.constant 0 : i32
    %c0_i32_1 = arith.constant 0 : i32
    return %arg1, %c0_i32, %c0_i32_0 : i32, i32, i32
  }
  func.func @transform_8(%arg0: i32, %arg1: i32) -> (i32, i32, i32) {
    %c0_i32 = arith.constant 0 : i32
    %c0_i32_0 = arith.constant 0 : i32
    %c0_i32_1 = arith.constant 0 : i32
    return %arg1, %c0_i32, %c0_i32_0 : i32, i32, i32
  }
  func.func @transform_9(%arg0: i32, %arg1: i32) -> (i32, i32, i32) {
    %c0_i32 = arith.constant 0 : i32
    %c0_i32_0 = arith.constant 0 : i32
    %c0_i32_1 = arith.constant 0 : i32
    return %arg1, %c0_i32, %c0_i32_0 : i32, i32, i32
  }
  func.func @transform_10(%arg0: i32, %arg1: i32) -> (i32, i32) {
    %c0_i32 = arith.constant 0 : i32
    %c0_i32_0 = arith.constant 0 : i32
    %c0_i32_1 = arith.constant 0 : i32
    return %c0_i32, %c0_i32_0 : i32, i32
  }
  func.func @transform_11(%arg0: i32, %arg1: i32) -> (i32, i32) {
    %c0_i32 = arith.constant 0 : i32
    %c0_i32_0 = arith.constant 0 : i32
    %c0_i32_1 = arith.constant 0 : i32
    return %c0_i32, %c0_i32_0 : i32, i32
  }
  func.func @transform_12(%arg0: i32, %arg1: i32) -> (i32, i32) {
    %c0_i32 = arith.constant 0 : i32
    %c0_i32_0 = arith.constant 0 : i32
    return %arg0, %c0_i32 : i32, i32
  }
}

</mosaic_0001>

<bundles_post_ra>
// kernel: tpu_custom_call.1
= control target key start
LH: loop header
LB: loop body
LE: loop exit
PB: predicated region body
PF: predicated region fallthrough
CT: control target
= control target key end

     0   :  { %s2499_s0 = inlined_call_operand.hbm [shape: bf16[16,32], index: 0, kind: input, shape index: {}]   ;;  %s2500_s1 = inlined_call_operand.hbm [shape: bf16[16,48], index: 1, kind: input, shape index: {}]   ;;  %s2501_s2 = inlined_call_operand.hbm [shape: bf16[32,128], index: 2, kind: input, shape index: {}]   ;;  %s2502_s3 = inlined_call_operand.vmem [shape: f32[1,128], index: 3, kind: input, shape index: {}]   ;;  %s2503_s4 = inlined_call_operand.hbm [shape: bf16[48,128], index: 4, kind: input, shape index: {}]   ;;  %s2504_s5 = inlined_call_operand.hbm [shape: f32[1,128], index: 5, kind: input, shape index: {}]   ;;  %s2505_s6 = inlined_call_operand.hbm [shape: bf16[2,128,256], index: 6, kind: input, shape index: {}]   ;;  %s2506_s7 = inlined_call_operand.vmem [shape: f32[2,1,256], index: 7, kind: input, shape index: {}]   ;;  %s2507_s8 = inlined_call_operand.hbm [shape: bf16[2,128,256], index: 8, kind: input, shape index: {}]   ;;  %s2508_s9 = inlined_call_operand.vmem [shape: f32[2,1,256], index: 9, kind: input, shape index: {}]   ;;  %s2509_s10 = inlined_call_operand.hbm [shape: bf16[128,128], index: 10, kind: input, shape index: {}]   ;;  %s2510_s11 = inlined_call_operand.vmem [shape: f32[1,128], index: 11, kind: input, shape index: {}]   ;;  %s2511_s12 = inlined_call_operand.hbm [shape: f32[16,128], index: 12, kind: output, shape index: {}]  }
   0x1   :  { %2525 = sst [smem:[#allocation30_spill]] %s2500_s1 }
   0x2   :  { %2526 = sst [smem:[#allocation31_spill]] %s2502_s3 }
   0x3   :  { %2527 = sst [smem:[#allocation32_spill]] %s2503_s4 }
   0x4   :  { %2528 = sst [smem:[#allocation33_spill]] %s2505_s6 }
   0x5   :  { %2529 = sst [smem:[#allocation34_spill]] %s2506_s7 }
   0x6   :  { %2530 = sst [smem:[#allocation35_spill]] %s2508_s9 }
   0x7   :  { %2531 = sst [smem:[#allocation36_spill]] %s2510_s11 }
   0x8   :  { %2532 = sst [smem:[#allocation37_spill]] %s2511_s12 }
   0x9   :  { %17 = vsyncpa [#allocation6], 0 }
   0xa   :  { %18 = vsyncpa [#allocation9], 0 }
   0xb   :  { %19 = vsyncpa [#allocation12], 0 }
   0xc   :  { %20 = vsyncpa [#allocation15], 0 }
   0xd   :  { %22 = vsyncpa [#allocation15 + $0x1], 0 }
   0xe   :  { %23 = vsyncpa [#allocation18], 0 }
   0xf   :  { %24 = vsyncpa [#allocation7], 0  ;;  %s2196_s21 = smov 0   ;;  %s2198_s22 = smov 0  }
  0x10   :  { %s2200_s23 = smov 0   ;;  %s2202_s24 = smov 0  }
  0x11   :  { %s2204_s25 = smov 0   ;;  %s2206_s26 = smov 0  }
  0x12 LB: > { %2533 = sst [smem:[#allocation26_spill]] %s2097_s23  ;;  %s2227_s27 = sadd.s32 4294967295, %s2109_s26   ;;  %s2109_s26 = sphi %s2206_s26, %s30_s26   ;;  %s2105_s25 = sphi %s2204_s25, %s2568_s25   ;;  %s2101_s24 = sphi %s2202_s24, %s2567_s24   ;;  %s2097_s23 = sphi %s2200_s23, %s2566_s23   ;;  %s2093_s22 = sphi %s2198_s22, %s2570_s22   ;;  %s2089_s21 = sphi %s2196_s21, %s2569_s21  }
  0x13   : > { %2534 = sst [smem:[#allocation27_spill]] %s2105_s25  ;;  %p1438_p0 = scmp.ge.s32.totalorder %s2109_s26, 1 }
  0x14   : > { %p2519_p1 = scmp.eq.s32.totalorder %s2227_s27, 0  ;;  %p355_p2 = scmp.lt.s32.totalorder %s2109_s26, 3 }
  0x15   : > { %s2111_s29 = smov [#allocation8]   ;;  %s2112_s13 = smov [#allocation11]  }
  0x16   : > { %p2232_p3 = pnand %p1438_p0, %p355_p2  ;;  %s386_s30 = sshll.u32 %s2111_s29, 4  ;;  %s387_s30 = int_to_ptr.vmem [resolvable:$true] %s386_s30 }
  0x17   : > { %s415_s14 = sshll.u32 %s2112_s13, 4  ;;  %s1814_s17 = scalar_lea.vmem %s387_s30, 128  ;;  %s416_s14 = int_to_ptr.vmem [resolvable:$true] %s415_s14 }
  0x18   : > { %s2535_s28 = scalar_select %p2232_p3, 1, 0 }
  0x19   : > { %p1631_p4 = pneg %p2232_p3  ;;  %p1815_p7 = scmp.ne.s32.totalorder %s387_s30, %s1814_s17 }
  0x1a   : > { %p1822_p10 = scmp.lt.s32.totalorder %s387_s30, %s387_s30  ;;  %p1823_p11 = scmp.lt.s32.totalorder %s1814_s17, %s1814_s17 }
  0x1b   : > { %p2240_p5 = pnand %p1631_p4, %p2519_p1 }
  0x1c   : > { %p1824_p12 = por %p1823_p11, %p1822_p10 }
  0x1d   : > { %p2246_p6 = pneg %p2240_p5 }
  0x1f   : > { %p1817_p8 = pnand %p1815_p7, %p2246_p6 }
  0x21   : > { %p1818_p9 = pneg %p1817_p8 }
  0x23   : > { %p1825_p13 = pnand %p1824_p12, %p1818_p9 }
  0x25   : > { %1828 = shalt.err (!%p1825_p13)
}
  0x26   : > { %s2512_s18 = smov 64   ;;  %s2514_s19 = smov 4  }
  0x27   : > { %s2538_s1 = sld [smem:[#allocation30_spill]]  ;;  %s1840_s13 = scalar_lea.vmem %s416_s14, 384 }
  0x28   : > { %p1841_p0 = scmp.ne.s32.totalorder %s416_s14, %s1840_s13  ;;  %p1848_p7 = scmp.lt.s32.totalorder %s416_s14, %s416_s14 }
  0x29   : > { %p1849_p8 = scmp.lt.s32.totalorder %s1840_s13, %s1840_s13 }
  0x2a   : > { %p1843_p2 = pnand %p1841_p0, %p2246_p6 }
  0x2b   : > { %p1850_p9 = por %p1849_p8, %p1848_p7 }
  0x2c   : > { %p1844_p4 = pneg %p1843_p2 }
  0x2d   : > { %1637 = dma.hbm_to_vmem [thread:$0]  (!%p2240_p5), %s2538_s1, 128, %s387_s30, [#allocation9], %s2512_s18, %s2512_s18, %s2514_s19  }
  0x2e   : > { %p1851_p10 = pnand %p1850_p9, %p1844_p4 }
  0x30   : > { %1854 = shalt.err (!%p1851_p10)
}
  0x31   : > { %s2539_s4 = sld [smem:[#allocation32_spill]]  ;;  %s39_s30 = sadd.s32 1, %s2105_s25 }
  0x32   : > { %s185_s20 = sadd.s32 1, %s2097_s23  ;;  %p40_p11 = scmp.ge.s32.totalorder %s39_s30, 2 }
  0x33   : > { %p192_p12 = scmp.ne.s32.totalorder %s2097_s23, %s2093_s22  ;;  %p193_p13 = scmp.eq.s32.totalorder %s2109_s26, 0 }
  0x34   : > { %p198_p0 = scmp.ne.s32.totalorder %s2093_s22, %s2089_s21  ;;  %s2572_s30 = smov (%p40_p11, %s39_s30), 0 }
  0x35   : > { %2540 = sst [smem:[#allocation28_spill]] %s2572_s30  ;;  %p2279_p2 = por %p193_p13, %p192_p12 }
  0x36   : > { %p2285_p4 = por %p2519_p1, %p198_p0  ;;  %p1663_p7 = scmp.lt.s32.totalorder %s2109_s26, 2 }
  0x37   : > { %1643 = dma.hbm_to_vmem [thread:$0]  (!%p2240_p5), %s2539_s4, 384, %s416_s14, [#allocation12], %s2512_s18, %s2512_s18, %s2514_s19  }
  0x38   : > { %s2542_s29 = scalar_select %p2285_p4, 1, 0 }
  0x39   : > { %s182_s14 = ssub.s32 %s2105_s25, %s2572_s30  ;;  %s456_s13 = sand.u32 1, %s2109_s26  }
  0x3a   : > { %p183_p8 = scmp.eq.s32.totalorder %s182_s14, 0  ;;  %s458_s17 = sand.u32 1, %s2097_s23  }
  0x3b   : > { %s2297_s21 = sshll.u32 %s458_s17, 7  ;;  %s1529_s19 = sshll.u32 %s2105_s25, 11 }
  0x3c   : > { %s2295_s18 = scalar_select %p183_p8, %s2097_s23, %s185_s20  }
  0x3d   : > { %s2544_s6 = sld [smem:[#allocation33_spill]]  ;;  %s460_s3 = scalar_lea.vmem [#allocation14], %s2297_s21 }
  0x3e   : > { %2543 = sst [smem:[#allocation29_spill]] %s2295_s18  ;;  %s467_s9 = sshll.u32 %s460_s3, 4  ;;  %s468_s9 = int_to_ptr.vmem [resolvable:$true] %s467_s9 }
  0x3f   : > { %p2306_p9 = pnand %p1663_p7, %p2279_p2  ;;  %s2310_s20 = scalar_lea.sflag [#allocation15], %s456_s13 }
  0x40   : > { %s1868_s14 = scalar_lea.vmem %s468_s9, 2048  ;;  %s2115_s1 = smov [#allocation14]  }
  0x41   : > { %s2545_s7 = scalar_select %p2306_p9, 1, 0 }
  0x42   : > { %p2520_p10 = pneg %p2306_p9  ;;  %p1869_p11 = scmp.ne.s32.totalorder %s468_s9, %s1868_s14 }
  0x43   : > { %s466_s11 = scalar_lea.hbm %s2544_s6, %s1529_s19  ;;  %s1873_s3 = sshll.u32 %s2115_s1, 4  ;;  %s1874_s3 = int_to_ptr.vmem [resolvable:$false] %s1873_s3 }
  0x44   : > { %p1871_p12 = pnand %p1869_p11, %p2520_p10  ;;  %s1875_s4 = scalar_lea.vmem %s1874_s3, 4096 }
  0x45   : > { %p1876_p0 = scmp.lt.s32.totalorder %s468_s9, %s1874_s3  ;;  %p1877_p2 = scmp.lt.s32.totalorder %s1875_s4, %s1868_s14 }
  0x46   : > { %p1872_p13 = pneg %p1871_p12 }
  0x47   : > { %p1878_p7 = por %p1877_p2, %p1876_p0 }
  0x49   : > { %p1879_p8 = pnand %p1878_p7, %p1872_p13 }
  0x4b   : > { %1882 = shalt.err (!%p1879_p8)
}
  0x4c   : > { %s2116_s12 = smov 128   ;;  %s2117_s13 = smov 8  }
  0x4d   : > { %1653 = dma.hbm_to_vmem [thread:$0]  (!%p2306_p9), %s466_s11, 2048, %s468_s9, %s2310_s20, %s2116_s12, %s2116_s12, %s2117_s13  }
  0x4e   : > { %s2326_s6 = scalar_lea.hbm %s2507_s8, %s1529_s19  ;;  %s488_s14 = scalar_lea.vmem [#allocation16], %s2297_s21 }
  0x4f   : > { %s495_s3 = sshll.u32 %s488_s14, 4  ;;  %s2118_s4 = smov [#allocation5]   ;;  %s2329_s3 = int_to_ptr.vmem [resolvable:$true] %s495_s3 }
  0x50   : > { %s370_s30 = sshll.u32 %s2118_s4, 4  ;;  %s2119_s25 = smov [#allocation10]   ;;  %s371_s30 = int_to_ptr.vmem [resolvable:$true] %s370_s30 }
  0x51   : > { %s399_s18 = sshll.u32 %s2119_s25, 4  ;;  %s1894_s23 = scalar_lea.vmem %s371_s30, 128  ;;  %s400_s18 = int_to_ptr.vmem [resolvable:$true] %s399_s18 }
  0x52   : > { %p1895_p11 = scmp.ne.s32.totalorder %s371_s30, %s1894_s23  ;;  %p1902_p0 = scmp.lt.s32.totalorder %s371_s30, %s371_s30 }
  0x53   : > { %p1903_p2 = scmp.lt.s32.totalorder %s1894_s23, %s1894_s23 }
  0x54   : > { %p1897_p12 = pnand %p1895_p11, %p2246_p6 }
  0x55   : > { %p1904_p7 = por %p1903_p2, %p1902_p0 }
  0x56   : > { %p1898_p13 = pneg %p1897_p12 }
  0x58   : > { %p1905_p8 = pnand %p1904_p7, %p1898_p13 }
  0x5a   : > { %1908 = shalt.err (!%p1905_p8)
}
  0x5b   : > { %s2546_s9 = smov 4   ;;  %s2547_s11 = smov 64  }
  0x5c   : > { %1634 = dma.hbm_to_vmem [thread:$0]  (!%p2240_p5), %s2499_s0, 128, %s371_s30, [#allocation6], %s2547_s11, %s2547_s11, %s2546_s9  }
  0x5d   : > { %s1920_s25 = scalar_lea.vmem %s400_s18, 256  ;;  %p1928_p10 = scmp.lt.s32.totalorder %s400_s18, %s400_s18 }
  0x5e   : > { %p1921_p1 = scmp.ne.s32.totalorder %s400_s18, %s1920_s25  ;;  %p1929_p4 = scmp.lt.s32.totalorder %s1920_s25, %s1920_s25 }
  0x60   : > { %p1923_p11 = pnand %p1921_p1, %p2246_p6  ;;  %p1930_p0 = por %p1929_p4, %p1928_p10 }
  0x62   : > { %p1924_p12 = pneg %p1923_p11 }
  0x64   : > { %p1931_p13 = pnand %p1930_p0, %p1924_p12 }
  0x66   : > { %1934 = shalt.err (!%p1931_p13)
}
  0x67   : > { %1640 = dma.hbm_to_vmem [thread:$0]  (!%p2240_p5), %s2501_s2, 256, %s400_s18, [#allocation9], %s2547_s11, %s2547_s11, %s2546_s9  }
  0x68   : > { %s2120_s30 = smov [#allocation13]   ;;  %s2121_s14 = smov [#allocation17]  }
  0x69   : > { %s429_s1 = sshll.u32 %s2120_s30, 4  ;;  %s439_s4 = sshll.u32 %s2121_s14, 4  ;;  %s430_s1 = int_to_ptr.vmem [resolvable:$true] %s429_s1  ;;  %s440_s4 = int_to_ptr.vmem [resolvable:$true] %s439_s4 }
  0x6a   : > { %s1946_s19 = scalar_lea.vmem %s430_s1, 16  ;;  %s1953_s21 = scalar_lea.vmem %s430_s1, 32 }
  0x6b   : > { %p1947_p1 = scmp.ne.s32.totalorder %s430_s1, %s1946_s19  ;;  %p1954_p2 = scmp.lt.s32.totalorder %s430_s1, %s430_s1 }
  0x6c   : > { %p1955_p7 = scmp.lt.s32.totalorder %s1953_s21, %s1946_s19 }
  0x6d   : > { %p1949_p4 = pnand %p1947_p1, %p2246_p6 }
  0x6e   : > { %p1956_p8 = por %p1955_p7, %p1954_p2 }
  0x6f   : > { %p1950_p10 = pneg %p1949_p4 }
  0x71   : > { %p1957_p11 = pnand %p1956_p8, %p1950_p10 }
  0x73   : > { %1960 = shalt.err (!%p1957_p11)
}
  0x74   : > { %1646 = dma.hbm_to_vmem [thread:$0]  (!%p2240_p5), %s2504_s5, 16, %s430_s1, [#allocation12]  }
  0x75   : > { %s1972_s23 = scalar_lea.vmem %s440_s4, 1024  ;;  %p1980_p1 = scmp.lt.s32.totalorder %s440_s4, %s440_s4 }
  0x76   : > { %p1973_p12 = scmp.ne.s32.totalorder %s440_s4, %s1972_s23  ;;  %p1981_p4 = scmp.lt.s32.totalorder %s1972_s23, %s1972_s23 }
  0x78   : > { %p1975_p0 = pnand %p1973_p12, %p2246_p6  ;;  %p1982_p3 = por %p1981_p4, %p1980_p1 }
  0x7a   : > { %p1976_p13 = pneg %p1975_p0 }
  0x7c   : > { %p1983_p9 = pnand %p1982_p3, %p1976_p13 }
  0x7e   : > { %1986 = shalt.err (!%p1983_p9)
}
  0x7f   : > { %1649 = dma.hbm_to_vmem [thread:$0]  (!%p2240_p5), %s2509_s10, 1024, %s440_s4, [#allocation18], %s2547_s11, %s2547_s11, %s2546_s9  }
  0x80   : > { %s2000_s16 = scalar_lea.vmem %s2329_s3, 2048  ;;  %p2548_p10 = scmp.ne.s32.totalorder %s2545_s7, 0 }
  0x81   : > { %p2001_p6 = scmp.ne.s32.totalorder %s2329_s3, %s2000_s16  ;;  %s2122_s1 = smov [#allocation16]  }
  0x82   : > { %p2549_p2 = pneg %p2548_p10  ;;  %s2005_s14 = sshll.u32 %s2122_s1, 4  ;;  %s2006_s14 = int_to_ptr.vmem [resolvable:$false] %s2005_s14 }
  0x83   : > { %s2007_s15 = scalar_lea.vmem %s2006_s14, 4096  ;;  %p2008_p9 = scmp.lt.s32.totalorder %s2329_s3, %s2006_s14 }
  0x84   : > { %p2003_p7 = pnand %p2001_p6, %p2549_p2  ;;  %p2009_p8 = scmp.lt.s32.totalorder %s2007_s15, %s2000_s16 }
  0x86   : > { %p2004_p3 = pneg %p2003_p7  ;;  %p2010_p11 = por %p2009_p8, %p2008_p9 }
  0x88   : > { %p2011_p12 = pnand %p2010_p11, %p2004_p3 }
  0x8a   : > { %2014 = shalt.err (!%p2011_p12)
}
  0x8b   : > { %1656 = dma.hbm_to_vmem [thread:$0]  (!%p2548_p10), %s2326_s6, 2048, %s2329_s3, %s2310_s20, %s2116_s12, %s2116_s12, %s2117_s13  }
  0x8c   : > { %p2550_p5 = scmp.ne.s32.totalorder %s2535_s28, 0 }
  0x8d   : > { %p2551_p0 = scmp.eq.s32.totalorder (!%p2550_p5), %s2227_s27, 0 }
  0x8e   : > { %514 = sbr.rel (%p2550_p5) target bundleno = 899 (0x383), region = 68 }
  0x93   : > { %2064 = dma.done.wait (%p2551_p0), [#allocation6], 128   ;;  %p2552_p13 = pmov %p2551_p0 }
  0x94   : > { %p2553_p1 = pmov %p2551_p0 }
  0x95   : > { %2066 = vsyncadd (%p2552_p13), [#allocation6], 4294967168 }
  0x96   : > { %2068 = dma.done.wait (%p2553_p1), [#allocation9], 384   ;;  %p2554_p4 = pmov %p2551_p0 }
  0x97   : > { %p2555_p6 = pmov %p2551_p0 }
  0x98   : > { %2070 = vsyncadd (%p2554_p4), [#allocation9], 4294966912 }
  0x99   : > { %2072 = dma.done.wait (%p2555_p6), [#allocation12], 400   ;;  %p2556_p10 = pmov %p2551_p0 }
  0x9a   : > { %s536_s6 = sand.u32 1, %s2227_s27   ;;  %s538_s7 = sand.u32 1, %s2093_s22  }
  0x9b   : > { %2074 = vsyncadd (%p2556_p10), [#allocation12], 4294966896  ;;  %s1458_s28 = sshll.u32 %s538_s7, 7  ;;  %s537_s20 = scalar_lea.sflag [#allocation15], %s536_s6 }
  0x9c   : > { %s2398_s12 = scalar_lea.vmem [#allocation14], %s1458_s28  ;;  %p2557_p2 = scmp.ne.s32.totalorder %s2542_s29, 0 }
  0x9e   : > { %2076 = dma.done.wait (%p2557_p2), %s537_s20, 4096  }
  0x9f   : > { %2078 = vsyncadd (%p2557_p2), %s537_s20, 4294963200  ;;  %s2404_s13 = scalar_lea.vmem [#allocation16], %s1458_s28  ;;  %p2558_p7 = pmov %p2551_p0 }
  0xa0   : > { %p2559_p3 = pmov %p2551_p0 }
  0xa1   : > { %2080 = dma.done.wait (%p2558_p7), [#allocation18], 1024  }
  0xa2   : > { %2082 = vsyncadd (%p2559_p3), [#allocation18], 4294966272  ;;  %p604_p9 = scmp.lt.s32.totalorder %s2101_s24, 1  ;;  %s2560_s19 = sld [smem:[#allocation34_spill]] }
  0xa3   : > { %s2561_s25 = sld [smem:[#allocation35_spill]]  ;;  %p1463_p8 = scmp.ne.s32.totalorder %s2101_s24, 0 }
  0xa4   : > { %s605_s3 = scalar_select %p604_p9, %s2101_s24, 1 }
  0xa5   : > { %617 = sbr.rel (%p1463_p8) target bundleno = 386 (0x182), region = 104  ;;  %s2562_s16 = sld [smem:[#allocation31_spill]] (!%p1463_p8) }
  0xa6   : > { %s1461_s9 = sshll.u32 %s605_s3, 1 }
  0xa8   : > { %s2415_s21 = scalar_lea.vmem %s2560_s19, %s1461_s9 }
  0xa9   : > { %s2420_s23 = scalar_lea.vmem %s2561_s25, %s1461_s9 }
  0xaa   : > { %v1738_v0 = vld [vmem:[#allocation10 + $0x8] sm:$0xff]   ;;  %v2123_v1 = vmov 0.0   ;;  %v1739_v2 = vld [vmem:[#allocation11 + $0x10] sm:$0xff]   ;;  %vm2124_vm0 = vmmov 0   ;;  %v1741_v4 = vld [vmem:[#allocation11 + $0x8] sm:$0xff]   ;;  %vm648_vm1 = vcmask 261120  }
  0xab   : > { %1561 = vmatprep.subr.bf16.mxu0 %v2123_v1  ;;  %1569 = vmatprep.subr.bf16.mxu1 %v2123_v1  ;;  %v1740_v3 = vld [vmem:[#allocation10] sm:$0xff]   ;;  %v1742_v5 = vld [vmem:[#allocation5] sm:$0xff]   ;;  %v1744_v7 = vld [vmem:[#allocation8] sm:$0xff]   ;;  %vm731_vm2 = vcmask 392192  }
  0xac   : > { %1562 = vmatpush3.bf16.msra.mxu0 %v1738_v0  ;;  %1565 = vmatprep.mubr.msk.bf16.mxu0 %vm2124_vm0, %v2123_v1  ;;  %v1743_v6 = vld [vmem:[#allocation11] sm:$0xff]   ;;  %v1469_v17 = vld [vmem:[#allocation13] ss:$0 sm:$0xff] }
  0xad   : > { %1570 = vmatpush3.bf16.msra.mxu1 %v1739_v2  ;;  %1563 = vmatprep.subr.bf16.mxu0 %v2123_v1  ;;  %v1464_v8 = vld [vmem:[%s2562_s16] ss:$0 sm:$0xff] }
  0xae   : > { %1571 = vmatprep.subr.bf16.mxu1 %v2123_v1  ;;  %1575 = vmatprep.mubr.msk.bf16.mxu1 %vm2124_vm0, %v2123_v1 }
  0xb0   : > { %1564 = vmatpush3.bf16.msra.mxu0 %v1740_v3 }
  0xb1   : > { %1572 = vmatpush3.bf16.msra.mxu1 %v1741_v4 }
  0xb2   : > { %1573 = vmatprep.subr.bf16.mxu1 %v2123_v1 }
  0xb3   : > { %1566 = vmatmul.mubr.msk.bf16.vlgmr.msra.gmra.mxu0 %vm648_vm1, %v1742_v5 }
  0xb5   : > { %1574 = vmatpush3.bf16.msra.mxu1 %v1743_v6 }
  0xb8   : > { %1576 = vmatmul.mubr.msk.bf16.vlgmr.msra.gmra.mxu1 %vm731_vm2, %v1744_v7 }
 0x173   : > { %v686_v9 = vpop.f32.mrf.mxu0 }
 0x174   : > { %v687_v11 = vadd.f32 %v1464_v8, %v686_v9 }
 0x175   : > { %v1567_v10 = vpop.f32.mrf.mxu0 }
 0x177   : > { %v689_v12 = vpop.f32.mrf.mxu0 }
 0x178   : > { %v690_v13 = vadd.f32 %v1464_v8, %v689_v12  ;;  %v769_v14 = vpop.f32.mrf.mxu1 }
 0x179   : > { %v1568_v15 = vpop.f32.mrf.mxu0  ;;  %v770_v20 = vadd.f32 %v1469_v17, %v769_v14 }
 0x17a   : > { %v1538_v16 = vpack.c.bf16 %v690_v13, %v687_v11  ;;  %v1577_v18 = vpop.f32.mrf.mxu1 }
 0x17c   : > { %1539 = vst [vmem:[#allocation2] sm:$0xff] %v1538_v16   ;;  %v772_v19 = vpop.f32.mrf.mxu1 }
 0x17d   : > { %v773_v21 = vadd.f32 %v1469_v17, %v772_v19 }
 0x17e   : > { %v1578_v22 = vpop.f32.mrf.mxu1 }
 0x17f   : > { %v1543_v23 = vpack.c.bf16 %v773_v21, %v770_v20 }
 0x181   : > { %1544 = vst [vmem:[#allocation3] sm:$0xff] %v1543_v23  }
 0x182 PF: > { %v1745_v24 = vld [vmem:[%s2398_s12 + $0x74] ss:$8 sps:$4 sm:$0xff]   ;;  %v2125_v26 = vmov 0   ;;  %v1749_v27 = vld [vmem:[%s2398_s12 + $0x70] ss:$8 sps:$4 sm:$0xff]   ;;  %v816_v59 = vlaneseq }
 0x183   : > { %v1747_v25 = vld [vmem:[%s2404_s13 + $0x74] ss:$8 sps:$4 sm:$0xff]   ;;  %944 = vmatprep.mubr.bf16.mxu0 %v2125_v26  ;;  %1103 = vmatprep.mubr.bf16.mxu1 %v2125_v26  ;;  %v1750_v28 = vld [vmem:[%s2404_s13 + $0x70] ss:$8 sps:$4 sm:$0xff]   ;;  %v1751_v29 = vld [vmem:[%s2398_s12 + $0x64] ss:$8 sps:$4 sm:$0xff]  }
 0x184   : > { %912 = vmatprep.subr.bf16.mxu0 %v1745_v24  ;;  %1071 = vmatprep.subr.bf16.mxu1 %v1747_v25  ;;  %v1753_v30 = vld [vmem:[%s2404_s13 + $0x64] ss:$8 sps:$4 sm:$0xff]   ;;  %v1755_v31 = vld [vmem:[%s2398_s12 + $0x60] ss:$8 sps:$4 sm:$0xff]   ;;  %v1757_v33 = vld [vmem:[%s2398_s12 + $0x54] ss:$8 sps:$4 sm:$0xff]  }
 0x185   : > { %913 = vmatpush1.bf16.msra.mxu0 %v1749_v27  ;;  %1072 = vmatpush1.bf16.msra.mxu1 %v1750_v28  ;;  %v1756_v32 = vld [vmem:[%s2404_s13 + $0x60] ss:$8 sps:$4 sm:$0xff]   ;;  %v1759_v34 = vld [vmem:[%s2404_s13 + $0x54] ss:$8 sps:$4 sm:$0xff]   ;;  %v1761_v35 = vld [vmem:[%s2398_s12 + $0x50] ss:$8 sps:$4 sm:$0xff]  }
 0x186   : > { %914 = vmatprep.subr.bf16.mxu0 %v1751_v29  ;;  %1073 = vmatprep.subr.bf16.mxu1 %v1753_v30  ;;  %v1762_v36 = vld [vmem:[%s2404_s13 + $0x50] ss:$8 sps:$4 sm:$0xff]   ;;  %v1763_v37 = vld [vmem:[%s2398_s12 + $0x44] ss:$8 sps:$4 sm:$0xff]   ;;  %v1767_v39 = vld [vmem:[%s2398_s12 + $0x40] ss:$8 sps:$4 sm:$0xff]  }
 0x187   : > { %v1765_v38 = vld [vmem:[%s2404_s13 + $0x44] ss:$8 sps:$4 sm:$0xff]   ;;  %v1768_v40 = vld [vmem:[%s2404_s13 + $0x40] ss:$8 sps:$4 sm:$0xff]   ;;  %v1769_v41 = vld [vmem:[%s2398_s12 + $0x34] ss:$8 sps:$4 sm:$0xff]  }
 0x188   : > { %v1771_v42 = vld [vmem:[%s2404_s13 + $0x34] ss:$8 sps:$4 sm:$0xff]   ;;  %v1773_v43 = vld [vmem:[%s2398_s12 + $0x30] ss:$8 sps:$4 sm:$0xff]   ;;  %v1775_v45 = vld [vmem:[%s2398_s12 + $0x24] ss:$8 sps:$4 sm:$0xff]  }
 0x189   : > { %915 = vmatpush1.bf16.msra.mxu0 %v1755_v31  ;;  %1074 = vmatpush1.bf16.msra.mxu1 %v1756_v32  ;;  %v1774_v44 = vld [vmem:[%s2404_s13 + $0x30] ss:$8 sps:$4 sm:$0xff]   ;;  %v1777_v46 = vld [vmem:[%s2404_s13 + $0x24] ss:$8 sps:$4 sm:$0xff]   ;;  %v1779_v47 = vld [vmem:[%s2398_s12 + $0x20] ss:$8 sps:$4 sm:$0xff]  }
 0x18a   : > { %916 = vmatprep.subr.bf16.mxu0 %v1757_v33  ;;  %1075 = vmatprep.subr.bf16.mxu1 %v1759_v34  ;;  %v1780_v48 = vld [vmem:[%s2404_s13 + $0x20] ss:$8 sps:$4 sm:$0xff]   ;;  %v1781_v49 = vld [vmem:[%s2398_s12 + $0x14] ss:$8 sps:$4 sm:$0xff]   ;;  %v1785_v51 = vld [vmem:[%s2398_s12 + $0x10] ss:$8 sps:$4 sm:$0xff]  }
 0x18b   : > { %v1783_v50 = vld [vmem:[%s2404_s13 + $0x14] ss:$8 sps:$4 sm:$0xff]   ;;  %v1786_v52 = vld [vmem:[%s2404_s13 + $0x10] ss:$8 sps:$4 sm:$0xff]   ;;  %v1787_v53 = vld [vmem:[%s2398_s12 + $0x4] ss:$8 sps:$4 sm:$0xff]  }
 0x18c   : > { %v1789_v54 = vld [vmem:[%s2404_s13 + $0x4] ss:$8 sps:$4 sm:$0xff]   ;;  %v1791_v55 = vld [vmem:[%s2398_s12] ss:$8 sps:$4 sm:$0xff]   ;;  %v817_v60 = vshrl.u32 %v816_v59, 7 }
 0x18d   : > { %917 = vmatpush1.bf16.msra.mxu0 %v1761_v35  ;;  %1076 = vmatpush1.bf16.msra.mxu1 %v1762_v36  ;;  %v1792_v56 = vld [vmem:[%s2404_s13] ss:$8 sps:$4 sm:$0xff]   ;;  %v1794_v58 = vld [vmem:[#allocation3] sm:$0xff]   ;;  %v814_v62 = vld [vmem:[%s2415_s21] sm:$0x3] }
 0x18e   : > { %918 = vmatprep.subr.bf16.mxu0 %v1763_v37  ;;  %1077 = vmatprep.subr.bf16.mxu1 %v1765_v38  ;;  %v1793_v57 = vld [vmem:[#allocation2] sm:$0xff]   ;;  %v818_v61 = vsub.s32 0, %v817_v60  ;;  %v822_v0 = vsub.s32 1, %v817_v60 }
 0x18f   : > { %v973_v63 = vld [vmem:[%s2420_s23] sm:$0x3] }
 0x190   : > { %v819_v1 = vrot.slane %v814_v62, %v818_v61  ;;  %v978_v2 = vrot.slane %v973_v63, %v818_v61  ;;  %v823_v3 = vrot.slane %v814_v62, %v822_v0  ;;  %v982_v4 = vrot.slane %v973_v63, %v822_v0 }
 0x191   : > { %919 = vmatpush1.bf16.msra.mxu0 %v1767_v39  ;;  %1078 = vmatpush1.bf16.msra.mxu1 %v1768_v40 }
 0x192   : > { %920 = vmatprep.subr.bf16.mxu0 %v1769_v41  ;;  %1079 = vmatprep.subr.bf16.mxu1 %v1771_v42 }
 0x195   : > { %921 = vmatpush1.bf16.msra.mxu0 %v1773_v43  ;;  %1080 = vmatpush1.bf16.msra.mxu1 %v1774_v44 }
 0x196   : > { %922 = vmatprep.subr.bf16.mxu0 %v1775_v45  ;;  %1081 = vmatprep.subr.bf16.mxu1 %v1777_v46 }
 0x199   : > { %923 = vmatpush1.bf16.msra.mxu0 %v1779_v47  ;;  %1082 = vmatpush1.bf16.msra.mxu1 %v1780_v48 }
 0x19a   : > { %924 = vmatprep.subr.bf16.mxu0 %v1781_v49  ;;  %1083 = vmatprep.subr.bf16.mxu1 %v1783_v50 }
 0x19d   : > { %925 = vmatpush1.bf16.msra.mxu0 %v1785_v51  ;;  %1084 = vmatpush1.bf16.msra.mxu1 %v1786_v52 }
 0x19e   : > { %926 = vmatprep.subr.bf16.mxu0 %v1787_v53  ;;  %1085 = vmatprep.subr.bf16.mxu1 %v1789_v54 }
 0x1a1   : > { %927 = vmatpush1.bf16.msra.mxu0 %v1791_v55  ;;  %1086 = vmatpush1.bf16.msra.mxu1 %v1792_v56 }
 0x1a4   : > { %945 = vmatmul.mubr.bf16.vlgmr.msra.gmra.mxu0 %v1793_v57  ;;  %1104 = vmatmul.mubr.bf16.vlgmr.msra.gmra.mxu1 %v1794_v58 }
 0x264   : > { %v946_v5 = vpop.f32.mrf.mxu0  ;;  %v1105_v6 = vpop.f32.mrf.mxu1 }
 0x265   : > { %v947_v7 = vadd.f32 %v946_v5, %v819_v1  ;;  %v1106_v8 = vadd.f32 %v1105_v6, %v978_v2 }
 0x266   : > { %v948_v9 = vpop.f32.mrf.mxu0  ;;  %v1107_v10 = vpop.f32.mrf.mxu1 }
 0x267   : > { %v949_v11 = vadd.f32 %v948_v9, %v823_v3  ;;  %v1108_v12 = vadd.f32 %v1107_v10, %v982_v4  ;;  %v1114_v15 = vmul.f32 %v1106_v8, %v947_v7 }
 0x268   : > { %v950_v13 = vpop.f32.mrf.mxu0  ;;  %v1109_v14 = vpop.f32.mrf.mxu1 }
 0x269   : > { %v1115_v16 = vmul.f32 %v1108_v12, %v949_v11  ;;  %v951_v17 = vadd.f32 %v950_v13, %v819_v1  ;;  %v1110_v18 = vadd.f32 %v1109_v14, %v978_v2 }
 0x26a   : > { %v952_v19 = vpop.f32.mrf.mxu0  ;;  %v1111_v20 = vpop.f32.mrf.mxu1 }
 0x26b   : > { %v1118_v21 = vadd.f32 %v1115_v16, %v1114_v15  ;;  %v953_v22 = vadd.f32 %v952_v19, %v823_v3  ;;  %v1112_v23 = vadd.f32 %v1111_v20, %v982_v4  ;;  %v1116_v24 = vmul.f32 %v1110_v18, %v951_v17  ;;  %1122 = sbr.rel (%p1463_p8) target bundleno = 626 (0x272), region = 108 }
 0x26d   : > { %v1117_v25 = vmul.f32 %v1112_v23, %v953_v22 }
 0x26f   : > { %v1119_v26 = vadd.f32 %v1117_v25, %v1116_v24 }
 0x270   : > { %1123 = vst [vmem:[#allocation4] sm:$0xff] %v1118_v21 }
 0x271   : > { %1124 = vst [vmem:[#allocation4 + $0x8] sm:$0xff] %v1119_v26 }
 0x272 PF: > { %p1514_p11 = scmp.eq.s32.totalorder %s2101_s24, 0 }
 0x274   : > { %1128 = sbr.rel (%p1514_p11) target bundleno = 637 (0x27d), region = 112 }
 0x279   : > { %v1129_v27 = vld [vmem:[#allocation4] sm:$0xff]  ;;  %v1130_v28 = vld [vmem:[#allocation4 + $0x8] sm:$0xff] }
 0x27a   : > { %v1131_v29 = vadd.f32 %v1129_v27, %v1118_v21  ;;  %v1132_v30 = vadd.f32 %v1130_v28, %v1119_v26 }
 0x27c   : > { %1133 = vst [vmem:[#allocation4] sm:$0xff] %v1131_v29  ;;  %1134 = vst [vmem:[#allocation4 + $0x8] sm:$0xff] %v1132_v30 }
 0x27d PF: > { %p1515_p12 = scmp.ne.s32.totalorder %s2101_s24, 1 }
 0x27e   : > { %s2563_s14 = sld [smem:[#allocation36_spill]] (!%p1515_p12) }
 0x27f   : > { %1138 = sbr.rel (%p1515_p12) target bundleno = 877 (0x36d), region = 116 }
 0x284   : > { %v1795_v31 = vld [vmem:[#allocation17 + $0x38] sm:$0xff]   ;;  %v2126_v32 = vmov 0.0   ;;  %v1796_v33 = vld [vmem:[#allocation17 + $0x30] sm:$0xff]   ;;  %vm2127_vm3 = vmmov 0   ;;  %v1797_v34 = vld [vmem:[#allocation17 + $0x28] sm:$0xff]  }
 0x285   : > { %1579 = vmatprep.subr.bf16.mxu0 %v2126_v32  ;;  %1595 = vmatprep.mubr.msk.bf16.mxu0 %vm2127_vm3, %v2126_v32  ;;  %v1798_v35 = vld [vmem:[#allocation17 + $0x20] sm:$0xff]   ;;  %v1799_v36 = vld [vmem:[#allocation17 + $0x18] sm:$0xff]   ;;  %v1800_v37 = vld [vmem:[#allocation17 + $0x10] sm:$0xff]  }
 0x286   : > { %1580 = vmatpush3.bf16.msra.mxu0 %v1795_v31  ;;  %v1801_v38 = vld [vmem:[#allocation17 + $0x8] sm:$0xff]   ;;  %v1802_v39 = vld [vmem:[#allocation17] sm:$0xff]   ;;  %v1139_v40 = vld [vmem:[#allocation4] sm:$0xff] }
 0x287   : > { %1581 = vmatprep.subr.bf16.mxu0 %v2126_v32  ;;  %v1140_v41 = vld [vmem:[#allocation4 + $0x8] sm:$0xff]  ;;  %v1516_v43 = vld [vmem:[%s2563_s14] ss:$0 sm:$0xff] }
 0x288   : > { %v1141_v42 = vpack.c.bf16 %v1140_v41, %v1139_v40 }
 0x28a   : > { %1582 = vmatpush3.bf16.msra.mxu0 %v1796_v33 }
 0x28b   : > { %1583 = vmatprep.subr.bf16.mxu0 %v2126_v32 }
 0x28e   : > { %1584 = vmatpush3.bf16.msra.mxu0 %v1797_v34 }
 0x28f   : > { %1585 = vmatprep.subr.bf16.mxu0 %v2126_v32 }
 0x292   : > { %1586 = vmatpush3.bf16.msra.mxu0 %v1798_v35 }
 0x293   : > { %1587 = vmatprep.subr.bf16.mxu0 %v2126_v32 }
 0x296   : > { %1588 = vmatpush3.bf16.msra.mxu0 %v1799_v36 }
 0x297   : > { %1589 = vmatprep.subr.bf16.mxu0 %v2126_v32 }
 0x29a   : > { %1590 = vmatpush3.bf16.msra.mxu0 %v1800_v37 }
 0x29b   : > { %1591 = vmatprep.subr.bf16.mxu0 %v2126_v32 }
 0x29e   : > { %1592 = vmatpush3.bf16.msra.mxu0 %v1801_v38 }
 0x29f   : > { %1593 = vmatprep.subr.bf16.mxu0 %v2126_v32 }
 0x2a2   : > { %1594 = vmatpush3.bf16.msra.mxu0 %v1802_v39 }
 0x2a5   : > { %1596 = vmatmul.mubr.bf16.vlgmr.msra.gmra.mxu0 %v1141_v42 }
 0x365   : > { %v1247_v44 = vpop.f32.mrf.mxu0 }
 0x366   : > { %v1248_v45 = vadd.f32 %v1516_v43, %v1247_v44 }
 0x367   : > { %v1597_v46 = vpop.f32.mrf.mxu0 }
 0x368   : > { %1254 = vst [vmem:[#allocation19] sm:$0xff] %v1248_v45 }
 0x369   : > { %v1250_v47 = vpop.f32.mrf.mxu0 }
 0x36a   : > { %v1251_v48 = vadd.f32 %v1516_v43, %v1250_v47 }
 0x36b   : > { %v1598_v49 = vpop.f32.mrf.mxu0 }
 0x36c   : > { %1255 = vst [vmem:[#allocation19 + $0x8] sm:$0xff] %v1251_v48 }
 0x36d PF: > { %p1670_p5 = scmp.eq.s32.totalorder %s2227_s27, 1  ;;  %s2128_s15 = smov [#allocation19]  }
 0x36e   : > { %s1265_s6 = sshll.u32 %s2128_s15, 4  ;;  %s1266_s6 = int_to_ptr.vmem [resolvable:$true] %s1265_s6 }
 0x36f   : > { %s2015_s7 = scalar_lea.vmem %s1266_s6, 256  ;;  %p2022_p4 = scmp.lt.s32.totalorder %s1266_s6, %s1266_s6 }
 0x370   : > { %p2016_p0 = scmp.ne.s32.totalorder %s1266_s6, %s2015_s7  ;;  %p2023_p6 = scmp.lt.s32.totalorder %s2015_s7, %s2015_s7 }
 0x372   : > { %p2017_p13 = pnand %p2016_p0, %p1670_p5  ;;  %p2024_p10 = por %p2023_p6, %p2022_p4 }
 0x374   : > { %p2018_p1 = pneg %p2017_p13 }
 0x376   : > { %p2025_p2 = pnand %p2024_p10, %p2018_p1 }
 0x378   : > { %2028 = shalt.err (!%p2025_p2)
}
 0x379   : > { %s2129_s28 = smov 128   ;;  %s2130_s20 = smov 8  }
 0x37a   : > { %s2564_s3 = sld [smem:[#allocation37_spill]] }
 0x380   : > { %1628 = dma.vmem_to_hbm [thread:$0]  (%p1670_p5), %s1266_s6, 256, %s2564_s3, [#allocation7], %s2129_s28, %s2129_s28, %s2130_s20  }
 0x381   : > { %2084 = dma.done.wait (%p1670_p5), [#allocation7], 256  }
 0x382   : > { %2086 = vsyncadd (%p1670_p5), [#allocation7], 4294967040 }
 0x383 PF: > { %s30_s26 = sadd.s32 1, %s2109_s26   ;;  %s2565_s9 = sld [smem:[#allocation26_spill]] }
 0x384   : > { %p27_p7 = scmp.ge.s32.totalorder %s30_s26, 4   ;;  %s2566_s23 = sld [smem:[#allocation29_spill]] }
 0x385   : > { %s2567_s24 = sld [smem:[#allocation27_spill]]  ;;  %s2569_s21 = smov %s2093_s22 }
 0x386   : > { %s2568_s25 = sld [smem:[#allocation28_spill]]  ;;  %29 = sbr.rel (!%p27_p7) target bundleno = 18 (0x12), region = 166 }
 0x389   : > { %s2570_s22 = smov %s2565_s9 }
 0x38b   :  { %1281 = vsyncpa [#allocation6], 1 }
 0x38c   :  { %1283 = vsyncpa [#allocation6 + $0x1], 1 }
 0x38d   :  { %1284 = vsyncpa [#allocation9], 1 }
 0x38e   :  { %1285 = vsyncpa [#allocation12], 1 }
 0x38f   :  { %1286 = vsyncpa [#allocation15], 1 }
 0x390   :  { %1288 = vsyncpa [#allocation15 + $0x1], 1 }
 0x391   :  { %1289 = vsyncpa [#allocation18], 1 }
 0x392   :  { %1290 = vsyncpa [#allocation7], 1 }
 0x393   :  { %1292 = vsyncpa [#allocation7 + $0x1], 1 }

</bundles_post_ra>
